<compile_context>
chip_gen: v6e
topology: v6e:2x2x1
jax: 0.10.0
libtpu: 0.0.40
codegen_flags: <defaults>
</compile_context>

<pallas_src>
import jax
import jax.numpy as jnp
from jax.experimental import pallas as pl
from jax.experimental.pallas import tpu as pltpu

HIDDEN = 256
LANE = 128
BF16_SUBLANE = 16   # bf16 sublane packing
TB_MAX = 1024       # max batch-tile rows; ~3-4 MiB per-tile footprint, fits v5e/v6e/v7x


def _round_up(x, m):
    return (x + m - 1) // m * m


def _cdiv(a, b):
    return -(-a // b)


def dqn_kernel(obs_ref, w1_ref, b1_ref, w2_ref, b2_ref, w3_ref, b3_ref, out_ref):
    a_out = out_ref.shape[-1]
    x = obs_ref[...]                                   # (TB, S) bf16, unpadded S
    # f32 accumulation on the MXU; bias add / ReLU in f32 on the VPU; activations
    # are immediately re-staged as bf16 (halves VMEM traffic between matmuls).
    h1 = jnp.dot(x, w1_ref[...], preferred_element_type=jnp.float32) + b1_ref[...]
    h1 = jnp.maximum(h1, 0.0).astype(jnp.bfloat16)
    h2 = jnp.dot(h1, w2_ref[...], preferred_element_type=jnp.float32) + b2_ref[...]
    h2 = jnp.maximum(h2, 0.0).astype(jnp.bfloat16)
    q = jnp.dot(h2, w3_ref[...], preferred_element_type=jnp.float32) + b3_ref[...]
    # Store only the real action lanes (out array is (B, A)); masked vst is cheap.
    out_ref[...] = q[:, :a_out].astype(out_ref.dtype)


def init_dqn_params(key, state_dim, act_dim, hidden=HIDDEN):
    """PyTorch-Linear-like init: U(-1/sqrt(fan_in), 1/sqrt(fan_in)), f32, unpadded."""
    ks = jax.random.split(key, 6)

    def lin(kw, kb, fan_in, fan_out):
        bound = 1.0 / jnp.sqrt(jnp.float32(fan_in))
        w = jax.random.uniform(kw, (fan_in, fan_out), jnp.float32, -bound, bound)
        b = jax.random.uniform(kb, (1, fan_out), jnp.float32, -bound, bound)
        return w, b

    w1, b1 = lin(ks[0], ks[1], state_dim, hidden)
    w2, b2 = lin(ks[2], ks[3], hidden, hidden)
    w3, b3 = lin(ks[4], ks[5], hidden, act_dim)
    return {"w1": w1, "b1": b1, "w2": w2, "b2": b2, "w3": w3, "b3": b3}


def prepare_params(params):
    """One-time bf16 cast; only w3/b3 get a lane pad (VMEM-side MXU tile), no S pad."""
    w1, b1, w2, b2, w3, b3 = (params[k] for k in ("w1", "b1", "w2", "b2", "w3", "b3"))
    S, H = w1.shape
    A = w3.shape[1]
    A_pad = _round_up(A, LANE)
    w3p = jnp.zeros((H, A_pad), jnp.bfloat16).at[:, :A].set(w3.astype(jnp.bfloat16))
    b3p = jnp.zeros((1, A_pad), jnp.float32).at[:, :A].set(b3.astype(jnp.float32))
    return {
        "w1": w1.astype(jnp.bfloat16), "b1": b1.astype(jnp.float32),
        "w2": w2.astype(jnp.bfloat16), "b2": b2.astype(jnp.float32),
        "w3": w3p, "b3": b3p,
        "state_dim": int(S), "act_dim": int(A),
    }


def dqn_forward(obs, prepped):
    """obs: (B, state_dim) float. Returns (B, act_dim) float32 Q-values."""
    w1, b1, w2, b2, w3, b3 = (prepped[k] for k in ("w1", "b1", "w2", "b2", "w3", "b3"))
    S = prepped["state_dim"]
    A = prepped["act_dim"]
    B = obs.shape[0]
    H = w1.shape[1]
    A_pad = w3.shape[1]

    # Tile the batch: pad only to the bf16 sublane multiple, exact tile division,
    # and an even tile count when >1 tile so v7x's 2 TCs get balanced work.
    n_tiles = _cdiv(B, TB_MAX)
    if n_tiles > 1 and n_tiles % 2 == 1:
        n_tiles += 1
    B_pad = _round_up(B, BF16_SUBLANE * n_tiles)
    tb = B_pad // n_tiles
    grid = (n_tiles,)

    obs_bf = obs.astype(jnp.bfloat16)
    if B_pad != B:
        obs_bf = jnp.pad(obs_bf, ((0, B_pad - B), (0, 0)))

    flops = 2 * B_pad * (S * H + H * H + H * A_pad)
    bytes_accessed = (obs_bf.size * 2
                      + w1.size * 2 + w2.size * 2 + w3.size * 2
                      + (b1.size + b2.size + b3.size) * 4
                      + B_pad * A * 4)

    q_pad = pl.pallas_call(
        dqn_kernel,
        out_shape=jax.ShapeDtypeStruct((B_pad, A), jnp.float32),
        grid=grid,
        in_specs=[
            pl.BlockSpec((tb, S), lambda i: (i, 0)),      # obs: tiled batch, S = full dim
            pl.BlockSpec((S, H), lambda i: (0, 0)),       # w1: VMEM-resident
            pl.BlockSpec((1, H), lambda i: (0, 0)),       # b1
            pl.BlockSpec((H, H), lambda i: (0, 0)),       # w2
            pl.BlockSpec((1, H), lambda i: (0, 0)),       # b2
            pl.BlockSpec((H, A_pad), lambda i: (0, 0)),   # w3 (lane-padded in VMEM only)
            pl.BlockSpec((1, A_pad), lambda i: (0, 0)),   # b3
        ],
        out_specs=pl.BlockSpec((tb, A), lambda i: (i, 0)),  # unpadded output lanes
        compiler_params=pltpu.CompilerParams(
            dimension_semantics=("parallel",)),
        cost_estimate=pl.CostEstimate(
            flops=flops, transcendentals=0, bytes_accessed=bytes_accessed),
    )(obs_bf, w1, b1, w2, b2, w3, b3)

    return q_pad[:B] if B_pad != B else q_pad


def dqn_reference_f32(obs, p):
    h1 = jnp.maximum(obs @ p["w1"] + p["b1"], 0.0)
    h2 = jnp.maximum(h1 @ p["w2"] + p["b2"], 0.0)
    return h2 @ p["w3"] + p["b3"]


def dqn_reference_bf16(obs, prepped):
    """Mirrors the kernel's bf16-staged / f32-accumulate numerics."""
    x = obs.astype(jnp.bfloat16)
    h1 = jnp.maximum(
        jnp.dot(x, prepped["w1"], preferred_element_type=jnp.float32)
        + prepped["b1"], 0.0).astype(jnp.bfloat16)
    h2 = jnp.maximum(
        jnp.dot(h1, prepped["w2"], preferred_element_type=jnp.float32)
        + prepped["b2"], 0.0).astype(jnp.bfloat16)
    q = jnp.dot(h2, prepped["w3"], preferred_element_type=jnp.float32) + prepped["b3"]
    return q[:, :prepped["act_dim"]]


if __name__ == "__main__":
    key = jax.random.PRNGKey(0)
    k_params, k_obs, k_obs2 = jax.random.split(key, 3)

    batch, state_dim, act_dim = 8, 16, 4
    params = init_dqn_params(k_params, state_dim, act_dim)
    prepped = prepare_params(params)

    # Small action-selection-sized batch (single tile, batch padded only to 16).
    obs = jax.random.normal(k_obs, (batch, state_dim), jnp.float32)
    q = jax.block_until_ready(dqn_forward(obs, prepped))
    assert q.shape == (batch, act_dim)
    q_bf = dqn_reference_bf16(obs, prepped)
    q_f32 = dqn_reference_f32(obs, params)
    assert jnp.allclose(q, q_bf, atol=1e-3, rtol=1e-3)
    assert jnp.allclose(q, q_f32, atol=5e-2, rtol=5e-2)

    # Training-sized batch: exercises the multi-tile (even tile count) grid path.
    big_batch = 1200
    obs2 = jax.random.normal(k_obs2, (big_batch, state_dim), jnp.float32)
    q2 = jax.block_until_ready(dqn_forward(obs2, prepped))
    assert q2.shape == (big_batch, act_dim)
    assert jnp.allclose(q2, dqn_reference_bf16(obs2, prepped), atol=1e-3, rtol=1e-3)
    assert jnp.allclose(q2, dqn_reference_f32(obs2, params), atol=5e-2, rtol=5e-2)

    print("KERNEL_OK")
</pallas_src>

<mosaic_0001>
module attributes {stable_mosaic.version = 11 : i64} {
  func.func @dqn_kernel(%arg0: i32, %arg1: memref<16x16xbf16, #tpu.memory_space<vmem>>, %arg2: memref<16x256xbf16, #tpu.memory_space<vmem>>, %arg3: memref<1x256xf32, #tpu.memory_space<vmem>>, %arg4: memref<256x256xbf16, #tpu.memory_space<vmem>>, %arg5: memref<1x256xf32, #tpu.memory_space<vmem>>, %arg6: memref<256x128xbf16, #tpu.memory_space<vmem>>, %arg7: memref<1x128xf32, #tpu.memory_space<vmem>>, %arg8: memref<16x4xf32, #tpu.memory_space<vmem>>) attributes {dimension_semantics = [#tpu.dimension_semantics<parallel>], iteration_bounds = array<i64: 1>, scalar_prefetch = 0 : i64, scratch_operands = 0 : i64, tpu.core_type = #tpu.core_type<tc>, window_params = [{transform_indices = @transform_0, window_bounds = array<i64: 16, 16>}, {pipeline_mode = #tpu.pipeline_mode<synchronous>, transform_indices = @transform_1, window_bounds = array<i64: 16, 256>}, {pipeline_mode = #tpu.pipeline_mode<synchronous>, transform_indices = @transform_2, window_bounds = array<i64: 1, 256>}, {pipeline_mode = #tpu.pipeline_mode<synchronous>, transform_indices = @transform_3, window_bounds = array<i64: 256, 256>}, {pipeline_mode = #tpu.pipeline_mode<synchronous>, transform_indices = @transform_4, window_bounds = array<i64: 1, 256>}, {pipeline_mode = #tpu.pipeline_mode<synchronous>, transform_indices = @transform_5, window_bounds = array<i64: 256, 128>}, {pipeline_mode = #tpu.pipeline_mode<synchronous>, transform_indices = @transform_6, window_bounds = array<i64: 1, 128>}, {transform_indices = @transform_7, window_bounds = array<i64: 16, 4>}]} {
    %c0 = arith.constant 0 : index
    %c0_0 = arith.constant 0 : index
    %0 = vector.load %arg1[%c0, %c0_0] : memref<16x16xbf16, #tpu.memory_space<vmem>>, vector<16x16xbf16>
    %c0_1 = arith.constant 0 : index
    %c0_2 = arith.constant 0 : index
    %1 = vector.load %arg2[%c0_1, %c0_2] : memref<16x256xbf16, #tpu.memory_space<vmem>>, vector<16x256xbf16>
    %cst = arith.constant dense<0.000000e+00> : vector<16x256xf32>
    %2 = tpu.matmul %0, %1, %cst {dimension_numbers = #tpu.dot_dimension_numbers<[1], [0], [0], [1], [0, 0, 1, 1], [], []>} : vector<16x16xbf16>, vector<16x256xbf16>, vector<16x256xf32> -> vector<16x256xf32>
    %c0_3 = arith.constant 0 : index
    %c0_4 = arith.constant 0 : index
    %3 = vector.load %arg3[%c0_3, %c0_4] : memref<1x256xf32, #tpu.memory_space<vmem>>, vector<1x256xf32>
    %4 = vector.broadcast %3 : vector<1x256xf32> to vector<16x256xf32>
    %5 = arith.addf %2, %4 : vector<16x256xf32>
    %cst_5 = arith.constant 0.000000e+00 : f32
    %6 = vector.broadcast %cst_5 : f32 to vector<16x256xf32>
    %7 = arith.maximumf %5, %6 : vector<16x256xf32>
    %8 = arith.truncf %7 : vector<16x256xf32> to vector<16x256xbf16>
    %c0_6 = arith.constant 0 : index
    %c0_7 = arith.constant 0 : index
    %9 = vector.load %arg4[%c0_6, %c0_7] : memref<256x256xbf16, #tpu.memory_space<vmem>>, vector<256x256xbf16>
    %cst_8 = arith.constant dense<0.000000e+00> : vector<16x256xf32>
    %10 = tpu.matmul %8, %9, %cst_8 {dimension_numbers = #tpu.dot_dimension_numbers<[1], [0], [0], [1], [0, 0, 1, 1], [], []>} : vector<16x256xbf16>, vector<256x256xbf16>, vector<16x256xf32> -> vector<16x256xf32>
    %c0_9 = arith.constant 0 : index
    %c0_10 = arith.constant 0 : index
    %11 = vector.load %arg5[%c0_9, %c0_10] : memref<1x256xf32, #tpu.memory_space<vmem>>, vector<1x256xf32>
    %12 = vector.broadcast %11 : vector<1x256xf32> to vector<16x256xf32>
    %13 = arith.addf %10, %12 : vector<16x256xf32>
    %cst_11 = arith.constant 0.000000e+00 : f32
    %14 = vector.broadcast %cst_11 : f32 to vector<16x256xf32>
    %15 = arith.maximumf %13, %14 : vector<16x256xf32>
    %16 = arith.truncf %15 : vector<16x256xf32> to vector<16x256xbf16>
    %c0_12 = arith.constant 0 : index
    %c0_13 = arith.constant 0 : index
    %17 = vector.load %arg6[%c0_12, %c0_13] : memref<256x128xbf16, #tpu.memory_space<vmem>>, vector<256x128xbf16>
    %cst_14 = arith.constant dense<0.000000e+00> : vector<16x128xf32>
    %18 = tpu.matmul %16, %17, %cst_14 {dimension_numbers = #tpu.dot_dimension_numbers<[1], [0], [0], [1], [0, 0, 1, 1], [], []>} : vector<16x256xbf16>, vector<256x128xbf16>, vector<16x128xf32> -> vector<16x128xf32>
    %c0_15 = arith.constant 0 : index
    %c0_16 = arith.constant 0 : index
    %19 = vector.load %arg7[%c0_15, %c0_16] : memref<1x128xf32, #tpu.memory_space<vmem>>, vector<1x128xf32>
    %20 = vector.broadcast %19 : vector<1x128xf32> to vector<16x128xf32>
    %21 = arith.addf %18, %20 : vector<16x128xf32>
    %22 = vector.extract_strided_slice %21 {offsets = [0, 0], sizes = [16, 4], strides = [1, 1]} : vector<16x128xf32> to vector<16x4xf32>
    %c0_17 = arith.constant 0 : index
    %c0_18 = arith.constant 0 : index
    %23 = vector.load %arg8[%c0_17, %c0_18] : memref<16x4xf32, #tpu.memory_space<vmem>>, vector<16x4xf32>
    tpu.vector_store %arg8[%c0_17, %c0_18], %22 {strides = array<i32>} : memref<16x4xf32, #tpu.memory_space<vmem>>, vector<16x4xf32>,
    return
  }
  func.func @transform_0(%arg0: i32) -> (i32, i32) {
    %c0_i32 = arith.constant 0 : i32
    %c0_i32_0 = arith.constant 0 : i32
    return %arg0, %c0_i32 : i32, i32
  }
  func.func @transform_1(%arg0: i32) -> (i32, i32) {
    %c0_i32 = arith.constant 0 : i32
    %c0_i32_0 = arith.constant 0 : i32
    %c0_i32_1 = arith.constant 0 : i32
    return %c0_i32, %c0_i32_0 : i32, i32
  }
  func.func @transform_2(%arg0: i32) -> (i32, i32) {
    %c0_i32 = arith.constant 0 : i32
    %c0_i32_0 = arith.constant 0 : i32
    %c0_i32_1 = arith.constant 0 : i32
    return %c0_i32, %c0_i32_0 : i32, i32
  }
  func.func @transform_3(%arg0: i32) -> (i32, i32) {
    %c0_i32 = arith.constant 0 : i32
    %c0_i32_0 = arith.constant 0 : i32
    %c0_i32_1 = arith.constant 0 : i32
    return %c0_i32, %c0_i32_0 : i32, i32
  }
  func.func @transform_4(%arg0: i32) -> (i32, i32) {
    %c0_i32 = arith.constant 0 : i32
    %c0_i32_0 = arith.constant 0 : i32
    %c0_i32_1 = arith.constant 0 : i32
    return %c0_i32, %c0_i32_0 : i32, i32
  }
  func.func @transform_5(%arg0: i32) -> (i32, i32) {
    %c0_i32 = arith.constant 0 : i32
    %c0_i32_0 = arith.constant 0 : i32
    %c0_i32_1 = arith.constant 0 : i32
    return %c0_i32, %c0_i32_0 : i32, i32
  }
  func.func @transform_6(%arg0: i32) -> (i32, i32) {
    %c0_i32 = arith.constant 0 : i32
    %c0_i32_0 = arith.constant 0 : i32
    %c0_i32_1 = arith.constant 0 : i32
    return %c0_i32, %c0_i32_0 : i32, i32
  }
  func.func @transform_7(%arg0: i32) -> (i32, i32) {
    %c0_i32 = arith.constant 0 : i32
    %c0_i32_0 = arith.constant 0 : i32
    return %arg0, %c0_i32 : i32, i32
  }
}

</mosaic_0001>

<bundles_post_ra>
// kernel: tpu_custom_call.1
= control target key start
LH: loop header
LB: loop body
LE: loop exit
PB: predicated region body
PF: predicated region fallthrough
CT: control target
= control target key end

     0   :  { %12 = vsyncpa [#allocation3], 0  ;;  %s925_s0 = inlined_call_operand.hbm [shape: bf16[16,16], index: 0, kind: input, shape index: {}]   ;;  %s926_s1 = inlined_call_operand.hbm [shape: bf16[16,256], index: 1, kind: input, shape index: {}]   ;;  %s927_s2 = inlined_call_operand.vmem [shape: f32[1,256], index: 2, kind: input, shape index: {}]   ;;  %s928_s3 = inlined_call_operand.hbm [shape: bf16[256,256], index: 3, kind: input, shape index: {}]   ;;  %s929_s4 = inlined_call_operand.vmem [shape: f32[1,256], index: 4, kind: input, shape index: {}]   ;;  %s930_s5 = inlined_call_operand.hbm [shape: bf16[256,128], index: 5, kind: input, shape index: {}]   ;;  %s931_s6 = inlined_call_operand.vmem [shape: f32[1,128], index: 6, kind: input, shape index: {}]   ;;  %s932_s7 = inlined_call_operand.vmem [shape: f32[16,4], index: 7, kind: output, shape index: {}]  }
   0x1   :  { %13 = vsyncpa [#allocation5], 0 }
   0x2   :  { %14 = vsyncpa [#allocation8], 0  ;;  %s843_s24 = smov [#allocation4]  }
   0x3   :  { %s32_s25 = sshll.u32 %s843_s24, 4  ;;  %s33_s25 = int_to_ptr.vmem [resolvable:$true] %s32_s25 }
   0x4   :  { %s765_s26 = scalar_lea.vmem %s33_s25, 256  ;;  %p770_p1 = scmp.lt.s32.totalorder %s33_s25, %s33_s25 }
   0x5   :  { %p766_p0 = scmp.ne.s32.totalorder %s33_s25, %s765_s26  ;;  %p771_p2 = scmp.lt.s32.totalorder %s765_s26, %s765_s26 }
   0x7   :  { %p772_p3 = por %p771_p2, %p770_p1 }
   0x9   :  { %p773_p4 = pnand %p772_p3, %p766_p0 }
   0xb   :  { %776 = shalt.err (!%p773_p4)
}
   0xc   :  { %s844_s27 = smov 128   ;;  %s845_s28 = smov 8  }
   0xd   :  { %38 = dma.hbm_to_vmem [thread:$0]  %s926_s1, 256, %s33_s25, [#allocation5], %s844_s27, %s844_s27, %s845_s28  }
   0xe   :  { %s846_s8 = smov [#allocation2]  }
   0xf   :  { %s20_s9 = sshll.u32 %s846_s8, 4  ;;  %s21_s9 = int_to_ptr.vmem [resolvable:$true] %s20_s9 }
  0x10   :  { %s785_s10 = scalar_lea.vmem %s21_s9, 128  ;;  %p790_p6 = scmp.lt.s32.totalorder %s21_s9, %s21_s9 }
  0x11   :  { %p786_p5 = scmp.ne.s32.totalorder %s21_s9, %s785_s10  ;;  %p791_p7 = scmp.lt.s32.totalorder %s785_s10, %s785_s10 }
  0x13   :  { %p792_p8 = por %p791_p7, %p790_p6 }
  0x15   :  { %p793_p9 = pnand %p792_p8, %p786_p5 }
  0x17   :  { %796 = shalt.err (!%p793_p9)
}
  0x18   :  { %s847_s11 = smov 64   ;;  %s848_s12 = smov 4  }
  0x19   :  { %26 = dma.hbm_to_vmem [thread:$0]  %s925_s0, 128, %s21_s9, [#allocation3], %s847_s11, %s847_s11, %s848_s12  }
  0x1a   :  { %s849_s15 = smov [#allocation6]   ;;  %s850_s17 = smov [#allocation7]  }
  0x1b   :  { %s46_s16 = sshll.u32 %s849_s15, 4  ;;  %s60_s1 = sshll.u32 %s850_s17, 4  ;;  %s47_s16 = int_to_ptr.vmem [resolvable:$true] %s46_s16  ;;  %s61_s1 = int_to_ptr.vmem [resolvable:$true] %s60_s1 }
  0x1c   :  { %s805_s18 = scalar_lea.vmem %s47_s16, 4096  ;;  %p810_p11 = scmp.lt.s32.totalorder %s47_s16, %s47_s16 }
  0x1d   :  { %p806_p10 = scmp.ne.s32.totalorder %s47_s16, %s805_s18  ;;  %p811_p12 = scmp.lt.s32.totalorder %s805_s18, %s805_s18 }
  0x1f   :  { %p812_p13 = por %p811_p12, %p810_p11 }
  0x21   :  { %p813_p0 = pnand %p812_p13, %p806_p10 }
  0x23   :  { %816 = shalt.err (!%p813_p0)
}
  0x24   :  { %52 = dma.hbm_to_vmem [thread:$0]  %s928_s3, 4096, %s47_s16, [#allocation5], %s844_s27, %s844_s27, %s845_s28  }
  0x25   :  { %s825_s0 = scalar_lea.vmem %s61_s1, 2048  ;;  %p830_p2 = scmp.lt.s32.totalorder %s61_s1, %s61_s1 }
  0x26   :  { %p826_p1 = scmp.ne.s32.totalorder %s61_s1, %s825_s0  ;;  %p831_p3 = scmp.lt.s32.totalorder %s825_s0, %s825_s0 }
  0x28   :  { %p832_p4 = por %p831_p3, %p830_p2 }
  0x2a   :  { %p833_p5 = pnand %p832_p4, %p826_p1 }
  0x2c   :  { %836 = shalt.err (!%p833_p5)
}
  0x2d   :  { %66 = dma.hbm_to_vmem [thread:$0]  %s930_s5, 2048, %s61_s1, [#allocation8], %s847_s11, %s847_s11, %s848_s12  }
  0x2e   :  { %837 = dma.done.wait [#allocation3], 128  }
  0x2f   :  { %838 = vsyncadd [#allocation3], 4294967168 }
  0x30   :  { %839 = dma.done.wait [#allocation5], 4352  }
  0x31   :  { %840 = vsyncadd [#allocation5], 4294962944 }
  0x32   :  { %841 = dma.done.wait [#allocation8], 2048  }
  0x33   :  { %842 = vsyncadd [#allocation8], 4294965248  ;;  %v851_v0 = vmov 0   ;;  %v689_v1 = vld [vmem:[#allocation4 + $0x4] ss:$8 sps:$4 sm:$0xff]   ;;  %v692_v3 = vld [vmem:[#allocation2] sm:$0xff]   ;;  %v88_v46 = vlaneseq }
  0x34   :  { %149 = vmatprep.mubr.bf16.mxu0 %v851_v0  ;;  %v691_v2 = vld [vmem:[#allocation4] ss:$8 sps:$4 sm:$0xff]   ;;  %131 = vmatprep.subr.bf16.mxu0 %v689_v1  ;;  %vm113_vm0 = vcmask 130048   ;;  %v693_v4 = vld [vmem:[#allocation6 + $0x74] ss:$8 sps:$4 sm:$0xff]   ;;  %v745_v40 = vld [vmem:[#allocation7 + $0x68] sm:$0xff]  }
  0x35   :  { %132 = vmatpush1.bf16.msra.mxu0 %v691_v2  ;;  %v695_v5 = vld [vmem:[#allocation6 + $0x70] ss:$8 sps:$4 sm:$0xff]   ;;  %v696_v6 = vld [vmem:[#allocation6 + $0x64] ss:$8 sps:$4 sm:$0xff]   ;;  %370 = vmatprep.subr.bf16.mxu1 %v693_v4  ;;  %v698_v7 = vld [vmem:[#allocation6 + $0x60] ss:$8 sps:$4 sm:$0xff]  }
  0x36   :  { %371 = vmatpush1.bf16.msra.mxu1 %v695_v5  ;;  %v699_v8 = vld [vmem:[#allocation6 + $0x54] ss:$8 sps:$4 sm:$0xff]   ;;  %v701_v9 = vld [vmem:[#allocation6 + $0x50] ss:$8 sps:$4 sm:$0xff]   ;;  %v702_v10 = vld [vmem:[#allocation6 + $0x44] ss:$8 sps:$4 sm:$0xff]  }
  0x37   :  { %372 = vmatprep.subr.bf16.mxu1 %v696_v6  ;;  %v704_v11 = vld [vmem:[#allocation6 + $0x40] ss:$8 sps:$4 sm:$0xff]   ;;  %v705_v12 = vld [vmem:[#allocation6 + $0x34] ss:$8 sps:$4 sm:$0xff]   ;;  %v707_v13 = vld [vmem:[#allocation6 + $0x30] ss:$8 sps:$4 sm:$0xff]  }
  0x38   :  { %608 = vmatmul.mubr.msk.bf16.vlgmr.msra.gmra.mxu0 %vm113_vm0, %v692_v3  ;;  %v708_v14 = vld [vmem:[#allocation6 + $0x24] ss:$8 sps:$4 sm:$0xff]   ;;  %v710_v15 = vld [vmem:[#allocation6 + $0x20] ss:$8 sps:$4 sm:$0xff]   ;;  %v711_v16 = vld [vmem:[#allocation6 + $0x14] ss:$8 sps:$4 sm:$0xff]  }
  0x39   :  { %v713_v17 = vld [vmem:[#allocation6 + $0x10] ss:$8 sps:$4 sm:$0xff]   ;;  %v714_v18 = vld [vmem:[#allocation6 + $0x4] ss:$8 sps:$4 sm:$0xff]   ;;  %v716_v19 = vld [vmem:[#allocation6] ss:$8 sps:$4 sm:$0xff]  }
  0x3a   :  { %373 = vmatpush1.bf16.msra.mxu1 %v698_v7  ;;  %v717_v20 = vld [vmem:[#allocation6 + $0xf4] ss:$8 sps:$4 sm:$0xff]   ;;  %v719_v21 = vld [vmem:[#allocation6 + $0xf0] ss:$8 sps:$4 sm:$0xff]   ;;  %v720_v22 = vld [vmem:[#allocation6 + $0xe4] ss:$8 sps:$4 sm:$0xff]  }
  0x3b   :  { %374 = vmatprep.subr.bf16.mxu1 %v699_v8  ;;  %v722_v23 = vld [vmem:[#allocation6 + $0xe0] ss:$8 sps:$4 sm:$0xff]   ;;  %v723_v24 = vld [vmem:[#allocation6 + $0xd4] ss:$8 sps:$4 sm:$0xff]   ;;  %v725_v25 = vld [vmem:[#allocation6 + $0xd0] ss:$8 sps:$4 sm:$0xff]  }
  0x3c   :  { %v726_v26 = vld [vmem:[#allocation6 + $0xc4] ss:$8 sps:$4 sm:$0xff]   ;;  %v728_v27 = vld [vmem:[#allocation6 + $0xc0] ss:$8 sps:$4 sm:$0xff]   ;;  %v729_v28 = vld [vmem:[#allocation6 + $0xb4] ss:$8 sps:$4 sm:$0xff]  }
  0x3d   :  { %v731_v29 = vld [vmem:[#allocation6 + $0xb0] ss:$8 sps:$4 sm:$0xff]   ;;  %v732_v30 = vld [vmem:[#allocation6 + $0xa4] ss:$8 sps:$4 sm:$0xff]   ;;  %v734_v31 = vld [vmem:[#allocation6 + $0xa0] ss:$8 sps:$4 sm:$0xff]  }
  0x3e   :  { %375 = vmatpush1.bf16.msra.mxu1 %v701_v9  ;;  %v735_v32 = vld [vmem:[#allocation6 + $0x94] ss:$8 sps:$4 sm:$0xff]   ;;  %v737_v33 = vld [vmem:[#allocation6 + $0x90] ss:$8 sps:$4 sm:$0xff]   ;;  %v738_v34 = vld [vmem:[#allocation6 + $0x84] ss:$8 sps:$4 sm:$0xff]  }
  0x3f   :  { %376 = vmatprep.subr.bf16.mxu1 %v702_v10  ;;  %v740_v35 = vld [vmem:[#allocation6 + $0x80] ss:$8 sps:$4 sm:$0xff]   ;;  %v741_v36 = vld [vmem:[#allocation7 + $0x78] sm:$0xff]   ;;  %v743_v38 = vld [vmem:[#allocation7 + $0x70] sm:$0xff]   ;;  %v89_v47 = vshrl.u32 %v88_v46, 7  ;;  %vm595_vm1 = vcmask 31744  }
  0x40   :  { %v742_v37 = vld [vmem:[#allocation7 + $0x38] sm:$0xff]   ;;  %658 = vmatprep.subr.bf16.mxu0 %v741_v36  ;;  %v744_v39 = vld [vmem:[#allocation7 + $0x30] sm:$0xff]   ;;  %v746_v41 = vld [vmem:[#allocation7 + $0x28] sm:$0xff]  }
  0x41   :  { %659 = vmatpush3.bf16.msra.mxu0 %v742_v37  ;;  %v747_v42 = vld [vmem:[#allocation7 + $0x60] sm:$0xff]   ;;  %v749_v44 = vld [vmem:[#allocation7 + $0x58] sm:$0xff]   ;;  %v94_v48 = vsub.s32 1, %v89_v47  ;;  %v90_v49 = vsub.s32 0, %v89_v47  ;;  %v86_v50 = vld [vmem:[%s927_s2] sm:$0x3] }
  0x42   :  { %377 = vmatpush1.bf16.msra.mxu1 %v704_v11  ;;  %660 = vmatprep.subr.bf16.mxu0 %v743_v38  ;;  %v748_v43 = vld [vmem:[#allocation7 + $0x20] sm:$0xff]   ;;  %v750_v45 = vld [vmem:[#allocation7 + $0x18] sm:$0xff]   ;;  %v751_v3 = vld [vmem:[#allocation7 + $0x50] sm:$0xff]  }
  0x43   :  { %378 = vmatprep.subr.bf16.mxu1 %v705_v12  ;;  %v95_v52 = vrot.slane %v86_v50, %v94_v48  ;;  %v91_v53 = vrot.slane %v86_v50, %v90_v49  ;;  %v752_v4 = vld [vmem:[#allocation7 + $0x10] sm:$0xff]   ;;  %v753_v5 = vld [vmem:[#allocation7 + $0x48] sm:$0xff]   ;;  %v755_v7 = vld [vmem:[#allocation7 + $0x40] sm:$0xff]  }
  0x44   :  { %v754_v6 = vld [vmem:[#allocation7 + $0x8] sm:$0xff]   ;;  %v756_v8 = vld [vmem:[#allocation7] sm:$0xff]  }
  0x45   :  { %661 = vmatpush3.bf16.msra.mxu0 %v744_v39  ;;  %v198_v9 = vld [vmem:[%s929_s4] sm:$0x3] }
  0x46   :  { %379 = vmatpush1.bf16.msra.mxu1 %v707_v13  ;;  %662 = vmatprep.subr.bf16.mxu0 %v745_v40  ;;  %v207_v11 = vrot.slane %v198_v9, %v94_v48  ;;  %v203_v12 = vrot.slane %v198_v9, %v90_v49 }
  0x47   :  { %380 = vmatprep.subr.bf16.mxu1 %v708_v14 }
  0x49   :  { %663 = vmatpush3.bf16.msra.mxu0 %v746_v41 }
  0x4a   :  { %381 = vmatpush1.bf16.msra.mxu1 %v710_v15  ;;  %664 = vmatprep.subr.bf16.mxu0 %v747_v42 }
  0x4b   :  { %382 = vmatprep.subr.bf16.mxu1 %v711_v16 }
  0x4d   :  { %665 = vmatpush3.bf16.msra.mxu0 %v748_v43 }
  0x4e   :  { %383 = vmatpush1.bf16.msra.mxu1 %v713_v17  ;;  %666 = vmatprep.subr.bf16.mxu0 %v749_v44 }
  0x4f   :  { %384 = vmatprep.subr.bf16.mxu1 %v714_v18 }
  0x51   :  { %667 = vmatpush3.bf16.msra.mxu0 %v750_v45 }
  0x52   :  { %385 = vmatpush1.bf16.msra.mxu1 %v716_v19  ;;  %668 = vmatprep.subr.bf16.mxu0 %v751_v3 }
  0x53   :  { %386 = vmatprep.subr.bf16.mxu1 %v717_v20 }
  0x55   :  { %669 = vmatpush3.bf16.msra.mxu0 %v752_v4 }
  0x56   :  { %387 = vmatpush2.bf16.msra.mxu1 %v719_v21  ;;  %670 = vmatprep.subr.bf16.mxu0 %v753_v5 }
  0x57   :  { %388 = vmatprep.subr.bf16.mxu1 %v720_v22 }
  0x59   :  { %671 = vmatpush3.bf16.msra.mxu0 %v754_v6 }
  0x5a   :  { %389 = vmatpush2.bf16.msra.mxu1 %v722_v23  ;;  %672 = vmatprep.subr.bf16.mxu0 %v755_v7 }
  0x5b   :  { %390 = vmatprep.subr.bf16.mxu1 %v723_v24 }
  0x5d   :  { %673 = vmatpush3.bf16.msra.mxu0 %v756_v8 }
  0x5e   :  { %391 = vmatpush2.bf16.msra.mxu1 %v725_v25 }
  0x5f   :  { %392 = vmatprep.subr.bf16.mxu1 %v726_v26 }
  0x62   :  { %393 = vmatpush2.bf16.msra.mxu1 %v728_v27  ;;  %v641_v27 = vld [vmem:[%s931_s6] ss:$0 sm:$0xff] }
  0x63   :  { %394 = vmatprep.subr.bf16.mxu1 %v729_v28 }
  0x66   :  { %395 = vmatpush2.bf16.msra.mxu1 %v731_v29 }
  0x67   :  { %396 = vmatprep.subr.bf16.mxu1 %v732_v30 }
  0x6a   :  { %397 = vmatpush2.bf16.msra.mxu1 %v734_v31 }
  0x6b   :  { %398 = vmatprep.subr.bf16.mxu1 %v735_v32 }
  0x6e   :  { %399 = vmatpush2.bf16.msra.mxu1 %v737_v33 }
  0x6f   :  { %400 = vmatprep.subr.bf16.mxu1 %v738_v34 }
  0x72   :  { %401 = vmatpush2.bf16.msra.mxu1 %v740_v35 }
  0xf8   :  { %v151_v51 = vpop.f32.mrf.mxu0 }
  0xf9   :  { %v152_v58 = vadd.f32 %v151_v51, %v91_v53 }
  0xfa   :  { %v153_v54 = vpop.f32.mrf.mxu0 }
  0xfb   :  { %v154_v56 = vadd.f32 %v153_v54, %v95_v52  ;;  %v160_v0 = vmax.f32 %v152_v58, 0.0 }
  0xfc   :  { %v155_v55 = vpop.f32.mrf.mxu0 }
  0xfd   :  { %v156_v57 = vadd.f32 %v155_v55, %v91_v53  ;;  %v161_v62 = vmax.f32 %v154_v56, 0.0 }
  0xfe   :  { %v157_v59 = vpop.f32.mrf.mxu0 }
  0xff   :  { %v158_v60 = vadd.f32 %v157_v59, %v95_v52  ;;  %v162_v61 = vmax.f32 %v156_v57, 0.0 }
 0x101   :  { %v163_v63 = vmax.f32 %v158_v60, 0.0  ;;  %v164_v2 = vpack.c.bf16 %v162_v61, %v160_v0 }
 0x103   :  { %v165_v1 = vpack.c.bf16 %v163_v63, %v161_v62 }
 0x105   :  { %402 = vmatprep.mubr.bf16.mxu1 %v165_v1 }
 0x106   :  { %403 = vmatmul.mubr.bf16.vlgmr.msra.gmra.mxu1 %v164_v2 }
 0x1c6   :  { %v404_v10 = vpop.f32.mrf.mxu1 }
 0x1c7   :  { %v405_v17 = vadd.f32 %v404_v10, %v203_v12 }
 0x1c8   :  { %v406_v13 = vpop.f32.mrf.mxu1 }
 0x1c9   :  { %v407_v15 = vadd.f32 %v406_v13, %v207_v11  ;;  %v413_v23 = vmax.f32 %v405_v17, 0.0 }
 0x1ca   :  { %v408_v14 = vpop.f32.mrf.mxu1 }
 0x1cb   :  { %v409_v16 = vadd.f32 %v408_v14, %v203_v12  ;;  %v414_v21 = vmax.f32 %v407_v15, 0.0 }
 0x1cc   :  { %v410_v18 = vpop.f32.mrf.mxu1 }
 0x1cd   :  { %v411_v19 = vadd.f32 %v410_v18, %v207_v11  ;;  %v415_v20 = vmax.f32 %v409_v16, 0.0 }
 0x1cf   :  { %v416_v22 = vmax.f32 %v411_v19, 0.0  ;;  %v417_v25 = vpack.c.bf16 %v415_v20, %v413_v23 }
 0x1d1   :  { %v418_v24 = vpack.c.bf16 %v416_v22, %v414_v21 }
 0x1d3   :  { %586 = vmatprep.mubr.bf16.mxu0 %v418_v24 }
 0x1d4   :  { %587 = vmatmul.mubr.bf16.vlgmr.msra.gmra.mxu0 %v417_v25 }
 0x294   :  { %v674_v26 = vpop.f32.mrf.mxu0 }
 0x296   :  { %v675_v28 = vpop.f32.mrf.mxu0 }
 0x297   :  { %v676_v29 = vadd.f32 %v675_v28, %v674_v26 }
 0x298   :  { %v677_v30 = vpop.f32.mrf.mxu0 }
 0x299   :  { %v589_v31 = vadd.f32 %v676_v29, %v641_v27 }
 0x29a   :  { %v678_v32 = vpop.f32.mrf.mxu0 }
 0x29b   :  { %596 = vst.msk [vmem:[%s932_s7] sm:$0xff] %vm595_vm1, %v589_v31  ;;  %v679_v33 = vadd.f32 %v678_v32, %v677_v30 }
 0x29d   :  { %v592_v34 = vadd.f32 %v679_v33, %v641_v27 }
 0x29f   :  { %597 = vst.msk [vmem:[%s932_s7 + $0x8] sm:$0xff] %vm595_vm1, %v592_v34 }
 0x2a0   :  { %602 = vsyncpa [#allocation3], 1 }
 0x2a1   :  { %603 = vsyncpa [#allocation5], 1 }
 0x2a2   :  { %604 = vsyncpa [#allocation8], 1 }

</bundles_post_ra>
